<compile_context>
chip_gen: v6e
topology: v6e:2x2x1
jax: 0.10.0
libtpu: 0.0.40
codegen_flags: <defaults>
</compile_context>

<pallas_src>
import math

import jax
import jax.numpy as jnp
from jax import lax
from jax.experimental import pallas as pl
from jax.experimental.pallas import tpu as pltpu

# ----------------------------- model sizes ---------------------------------
B        = 2                     # batch (list of TrainingData)
NA       = 10                    # atoms per sample
NA_PAD   = 16                    # padded atoms (so B*NA_PAD is 8-aligned)
P        = 8                     # primitives per sample (rows of pre_features)
A_BASIS  = 32                    # schnet n_atom_basis
F_EXTRA  = 5                     # extra per-primitive features
EF       = 3 + F_EXTRA           # encode(3) + features(5)
DIN      = EF + A_BASIS          # obs feature dim = 40
HID      = 32                    # hidden_size
NH       = 4                     # n_head
DH       = HID // NH
ACT      = 6                     # act_size
OUT_LANES = 128                  # padded output lane width (unmasked store)

# ------------------------- activation slab layout (rows, 32 lanes) ----------
R_SCAT  = 0                      # 16 rows : block-diag scatter  (B*P, B*NA_PAD)
R_ATOM  = 16                     # 32 rows : atoms features       (B*NA_PAD, A_BASIS)
R_ENCFX = 48                     # 16 rows : [encode|features]    (B*P, EF)
R_BIAS  = 64                     # 16 rows : additive attn bias   (B*P, P)
R_POOL  = 80                     #  2 rows : pooling matrix       (B, B*P)
ACT_ROWS, ACT_LANES = 88, 32

# --------------------------- weight slab layout (rows, 128 lanes) -----------
W_QKV_PRIM = 0                   # 32 rows : prim rows of fused Wqkv   (A_BASIS, 96)
W_QKV_EF   = 32                  #  8 rows : enc/feat rows of Wqkv     (EF, 96)
W_BQKV     = 40                  #  1 row  : fused qkv bias            (1, 96)
W_WO       = 48                  # 32 rows : Wo                        (HID, HID)
W_BO       = 80                  #  1 row  : bo                        (1, HID)
W_WH       = 88                  # 32 rows : Wh (padded to 128 cols)   (HID, ACT)
W_BH       = 120                 #  1 row  : bh (padded)               (1, ACT)
W_ROWS, W_LANES = 128, 128


# --------------------------- fused Pallas kernel -----------------------------
def actor_kernel(act_ref, w_ref, out_ref):
    # ---- primitives_features: one block-diagonal gather matmul (16,32)@(32,32)
    scatter = act_ref[R_SCAT:R_SCAT + B * P, :]                       # (16, 32)
    atoms   = act_ref[R_ATOM:R_ATOM + B * NA_PAD, :]                  # (32, 32)
    prim    = jnp.dot(scatter, atoms, preferred_element_type=jnp.float32)

    # ---- fused QKV projection, no input concat (weight rows split host-side)
    encfx = act_ref[R_ENCFX:R_ENCFX + B * P, 0:EF]                    # (16, 8)
    qkv = (jnp.dot(prim,  w_ref[W_QKV_PRIM:W_QKV_PRIM + A_BASIS, :],
                   preferred_element_type=jnp.float32)
           + jnp.dot(encfx, w_ref[W_QKV_EF:W_QKV_EF + EF, :],
                     preferred_element_type=jnp.float32)
           + w_ref[W_BQKV:W_BQKV + 1, :])                             # (16, 128); cols 96+ zero

    # ---- masked multi-head attention (static loops, tiny tiles) -------------
    o_rows = []
    for b in range(B):
        qkv_b  = qkv[b * P:(b + 1) * P, :]                            # (P, 128)
        bias_b = act_ref[R_BIAS + b * P:R_BIAS + (b + 1) * P, 0:P]    # (P, P) additive mask
        o_b = None
        for h in range(NH):
            qh = qkv_b[:, h * DH:(h + 1) * DH]                        # scale pre-folded
            kh = qkv_b[:, HID + h * DH:HID + (h + 1) * DH]
            vh = qkv_b[:, 2 * HID + h * DH:2 * HID + (h + 1) * DH]
            s = lax.dot_general(qh, kh, (((1,), (1,)), ((), ())),
                                preferred_element_type=jnp.float32) + bias_b
            s = s - jnp.max(s, axis=-1, keepdims=True)
            pexp = jnp.exp(s)
            inv = pl.reciprocal(jnp.sum(pexp, axis=-1, keepdims=True) + 1e-9,
                                approx=True)
            ctx = jnp.dot(pexp * inv, vh, preferred_element_type=jnp.float32)  # (P, DH)
            part = jnp.dot(ctx, w_ref[W_WO + h * DH:W_WO + (h + 1) * DH, :],
                           preferred_element_type=jnp.float32)        # (P, 128)
            o_b = part if o_b is None else o_b + part
        o_rows.append(o_b)

    o_all = jnp.concatenate(o_rows, axis=0) + w_ref[W_BO:W_BO + 1, :]  # (16, 128)

    # ---- masked-mean pooling: one matmul with 1/denom pre-folded host-side ---
    pool   = act_ref[R_POOL:R_POOL + B, 0:B * P]                      # (B, 16)
    pooled = jnp.dot(pool, o_all, preferred_element_type=jnp.float32)  # (B, 128)

    # ---- head linear + ModelActor final tanh; padded 128-lane store ----------
    logits = jnp.dot(pooled[:, 0:HID], w_ref[W_WH:W_WH + HID, :],
                     preferred_element_type=jnp.float32) + w_ref[W_BH:W_BH + 1, :]
    out_ref[...] = jnp.tanh(logits)


def actor_pallas(act_slab, w_slab):
    return pl.pallas_call(
        actor_kernel,
        out_shape=jax.ShapeDtypeStruct((B, OUT_LANES), jnp.float32),
        in_specs=[pl.BlockSpec(memory_space=pltpu.MemorySpace.VMEM),
                  pl.BlockSpec(memory_space=pltpu.MemorySpace.VMEM)],
        out_specs=pl.BlockSpec(memory_space=pltpu.MemorySpace.VMEM),
    )(act_slab, w_slab)


# ------------------------------- packing -------------------------------------
def _pad_lanes(a, w):
    return jnp.pad(a, ((0, 0), (0, w - a.shape[1])))


def _pad_rows(a, r):
    return jnp.pad(a, ((0, r - a.shape[0]), (0, 0)))


def build_weight_slab(params):
    """Pack all 10 parameter tensors into one (128, 128) f32 slab."""
    Wq, bq, Wk, bk, Wv, bv, Wo, bo, Wh, bh = params
    scale = 1.0 / math.sqrt(DH)
    Wqkv = jnp.concatenate([Wq * scale, Wk, Wv], axis=1)              # (DIN, 96)
    bqkv = jnp.concatenate([bq * scale, bk, bv], axis=1)              # (1, 96)
    # obs column order is [encode(3) | prim(32) | features(5)]
    W_prim = Wqkv[3:3 + A_BASIS, :]                                   # (32, 96)
    W_ef = jnp.concatenate([Wqkv[:3, :], Wqkv[3 + A_BASIS:, :]], axis=0)  # (8, 96)

    slab = jnp.concatenate([
        _pad_lanes(W_prim, W_LANES),                                  # rows   0:32
        _pad_lanes(W_ef, W_LANES),                                    # rows  32:40
        _pad_rows(_pad_lanes(bqkv, W_LANES), 8),                      # rows  40:48
        _pad_lanes(Wo, W_LANES),                                      # rows  48:80
        _pad_rows(_pad_lanes(bo, W_LANES), 8),                        # rows  80:88
        _pad_lanes(Wh, W_LANES),                                      # rows  88:120
        _pad_rows(_pad_lanes(bh, W_LANES), 8),                        # rows 120:128
    ], axis=0)
    assert slab.shape == (W_ROWS, W_LANES)
    return slab


def build_activation_slab(atomic_nums, pre_features, emb_table):
    """JAX port of `transform` preprocessing, packed into one (88, 32) f32 slab."""
    atoms_features = jnp.take(emb_table, atomic_nums, axis=0)         # (B, NA, A_BASIS)

    coords_mask = pre_features[:, :, -1]                              # (B, P)
    encode = pre_features[:, :, :3]                                   # (B, P, 3)
    indices = pre_features[:, :, 3:3 + 4].astype(jnp.int32)           # (B, P, 4)
    features = pre_features[:, :, 3 + 4:-1]                           # (B, P, F_EXTRA)

    # gather+sum expressed as a block-diagonal scatter matrix (atoms padded to 16)
    valid = (indices > -1)
    safe_idx = jnp.where(valid, indices, 0)
    oh = jax.nn.one_hot(safe_idx, NA, dtype=jnp.float32) * valid[..., None].astype(jnp.float32)
    scatter = oh.sum(axis=2)                                          # (B, P, NA)
    scatter = jnp.pad(scatter, ((0, 0), (0, 0), (0, NA_PAD - NA)))    # (B, P, NA_PAD)
    eyeB = jnp.eye(B, dtype=jnp.float32)
    scatter_blk = (eyeB[:, None, :, None] * scatter[:, :, None, :]
                   ).reshape(B * P, B * NA_PAD)                       # (16, 32)

    atoms_flat = jnp.pad(atoms_features,
                         ((0, 0), (0, NA_PAD - NA), (0, 0))).reshape(B * NA_PAD, A_BASIS)

    encfx = jnp.concatenate([encode, features], axis=-1).reshape(B * P, EF)  # (16, 8)

    # additive attention bias (replaces in-kernel where/select chains)
    attn_bias = jnp.where(coords_mask[:, None, :] > 0.0, 0.0, -1e30)  # (B, 1, P)
    attn_bias = jnp.broadcast_to(attn_bias, (B, P, P)).reshape(B * P, P)

    # block-diagonal pooling matrix with 1/denom folded in (exact)
    denom = coords_mask.sum(-1, keepdims=True) + 1e-9                 # (B, 1)
    pool = (eyeB[:, :, None] * (coords_mask / denom)[None, :, :]).reshape(B, B * P)

    slab = jnp.concatenate([
        scatter_blk,                                                  # rows  0:16
        atoms_flat,                                                   # rows 16:48
        _pad_lanes(encfx, ACT_LANES),                                 # rows 48:64
        _pad_lanes(attn_bias, ACT_LANES),                             # rows 64:80
        _pad_lanes(pool, ACT_LANES),                                  # rows 80:82
    ], axis=0)
    slab = _pad_rows(slab, ACT_ROWS)                                  # (88, 32)
    return slab


@jax.jit
def model_actor_forward(atomic_nums, pre_features, emb_table, w_slab):
    act_slab = build_activation_slab(atomic_nums, pre_features, emb_table)
    out = actor_pallas(act_slab, w_slab)
    return out[:, :ACT]


# -------------------------- pure-JAX reference -------------------------------
def model_actor_reference(atomic_nums, pre_features, emb_table, params):
    Wq, bq, Wk, bk, Wv, bv, Wo, bo, Wh, bh = params
    atoms_feat = jnp.take(emb_table, atomic_nums, axis=0)             # (B, NA, A_BASIS)
    mask = pre_features[:, :, -1]
    encode = pre_features[:, :, :3]
    indices = pre_features[:, :, 3:3 + 4].astype(jnp.int32)
    features = pre_features[:, :, 3 + 4:-1]
    valid = (indices > -1).astype(jnp.float32)
    safe = jnp.where(indices > -1, indices, 0)
    oh = jax.nn.one_hot(safe, NA, dtype=jnp.float32) * valid[..., None]
    prim = jnp.einsum('bpkn,bna->bpa', oh, atoms_feat)                # gather * mask, sum
    x = jnp.concatenate([encode, prim, features], axis=-1)            # (B, P, DIN)
    q = x @ Wq + bq
    k = x @ Wk + bk
    v = x @ Wv + bv
    mk = mask[:, None, :]                                             # (B, 1, P)
    outs = []
    for h in range(NH):
        qh, kh, vh = (t[..., h * DH:(h + 1) * DH] for t in (q, k, v))
        s = jnp.einsum('bqd,bkd->bqk', qh, kh) / math.sqrt(DH)
        s = jnp.where(mk > 0.0, s, -1e30)
        s = s - s.max(-1, keepdims=True)
        p = jnp.exp(s)
        p = p / (p.sum(-1, keepdims=True) + 1e-9)
        outs.append(jnp.einsum('bqk,bkd->bqd', p, vh))
    o = jnp.concatenate(outs, axis=-1) @ Wo + bo                      # (B, P, HID)
    denom = mask.sum(-1, keepdims=True) + 1e-9
    pooled = jnp.einsum('bp,bph->bh', mask, o) / denom
    return jnp.tanh(pooled @ Wh + bh)


# ------------------------------- main ----------------------------------------
if __name__ == "__main__":
    key = jax.random.PRNGKey(0)
    keys = jax.random.split(key, 16)

    # deterministic parameters (synthetic init, no checkpoint load)
    emb_table = 0.1 * jax.random.normal(keys[0], (100, A_BASIS), jnp.float32)
    Wq = 0.1 * jax.random.normal(keys[1], (DIN, HID), jnp.float32)
    bq = jnp.zeros((1, HID), jnp.float32)
    Wk = 0.1 * jax.random.normal(keys[2], (DIN, HID), jnp.float32)
    bk = jnp.zeros((1, HID), jnp.float32)
    Wv = 0.1 * jax.random.normal(keys[3], (DIN, HID), jnp.float32)
    bv = jnp.zeros((1, HID), jnp.float32)
    Wo = 0.1 * jax.random.normal(keys[4], (HID, HID), jnp.float32)
    bo = jnp.zeros((1, HID), jnp.float32)
    Wh = 0.1 * jax.random.normal(keys[5], (HID, ACT), jnp.float32)
    bh = jnp.zeros((1, ACT), jnp.float32)
    logstd = jnp.zeros((ACT,), jnp.float32)  # nn.Parameter(zeros); unused in forward
    params = (Wq, bq, Wk, bk, Wv, bv, Wo, bo, Wh, bh)

    w_slab = build_weight_slab(params)       # built once; single packed weight operand

    # deterministic example "batch_data"
    atomic_nums = jax.random.randint(keys[6], (B, NA), 1, 10)
    encode = jax.random.normal(keys[7], (B, P, 3), jnp.float32)
    indices = jax.random.randint(keys[8], (B, P, 4), -1, NA).astype(jnp.float32)
    features = jax.random.normal(keys[9], (B, P, F_EXTRA), jnp.float32)
    coords_mask = jax.random.bernoulli(keys[10], 0.7, (B, P)).astype(jnp.float32)
    pre_features = jnp.concatenate(
        [encode, indices, features, coords_mask[..., None]], axis=-1)   # (B, P, 13)

    out = model_actor_forward(atomic_nums, pre_features, emb_table, w_slab)
    out = jax.block_until_ready(out)

    ref = model_actor_reference(atomic_nums, pre_features, emb_table, params)

    assert out.shape == (B, ACT)
    assert bool(jnp.all(jnp.isfinite(out)))
    assert bool(jnp.all(jnp.abs(out) <= 1.0))                 # tanh range
    assert bool(jnp.allclose(out, ref, atol=1e-2, rtol=1e-2))
    print("KERNEL_OK")
</pallas_src>

<mosaic_0001>
module attributes {stable_mosaic.version = 11 : i64} {
  func.func @actor_kernel(%arg0: memref<88x32xf32, #tpu.memory_space<vmem>>, %arg1: memref<128x128xf32, #tpu.memory_space<vmem>>, %arg2: memref<2x128xf32, #tpu.memory_space<vmem>>) attributes {dimension_semantics = [], scalar_prefetch = 0 : i64, scratch_operands = 0 : i64, tpu.core_type = #tpu.core_type<tc>} {
    %c0 = arith.constant 0 : index
    %c0_0 = arith.constant 0 : index
    %0 = vector.load %arg0[%c0, %c0_0] : memref<88x32xf32, #tpu.memory_space<vmem>>, vector<16x32xf32>
    %c16 = arith.constant 16 : index
    %c0_1 = arith.constant 0 : index
    %1 = vector.load %arg0[%c16, %c0_1] : memref<88x32xf32, #tpu.memory_space<vmem>>, vector<32x32xf32>
    %cst = arith.constant dense<0.000000e+00> : vector<16x32xf32>
    %2 = tpu.matmul %0, %1, %cst {dimension_numbers = #tpu.dot_dimension_numbers<[1], [0], [0], [1], [0, 0, 1, 1], [], []>} : vector<16x32xf32>, vector<32x32xf32>, vector<16x32xf32> -> vector<16x32xf32>
    %c48 = arith.constant 48 : index
    %c0_2 = arith.constant 0 : index
    %3 = vector.load %arg0[%c48, %c0_2] : memref<88x32xf32, #tpu.memory_space<vmem>>, vector<16x8xf32>
    %c0_3 = arith.constant 0 : index
    %c0_4 = arith.constant 0 : index
    %4 = vector.load %arg1[%c0_3, %c0_4] : memref<128x128xf32, #tpu.memory_space<vmem>>, vector<32x128xf32>
    %cst_5 = arith.constant dense<0.000000e+00> : vector<16x128xf32>
    %5 = tpu.matmul %2, %4, %cst_5 {dimension_numbers = #tpu.dot_dimension_numbers<[1], [0], [0], [1], [0, 0, 1, 1], [], []>} : vector<16x32xf32>, vector<32x128xf32>, vector<16x128xf32> -> vector<16x128xf32>
    %c32 = arith.constant 32 : index
    %c0_6 = arith.constant 0 : index
    %6 = vector.load %arg1[%c32, %c0_6] : memref<128x128xf32, #tpu.memory_space<vmem>>, vector<8x128xf32>
    %cst_7 = arith.constant dense<0.000000e+00> : vector<16x128xf32>
    %7 = tpu.matmul %3, %6, %cst_7 {dimension_numbers = #tpu.dot_dimension_numbers<[1], [0], [0], [1], [0, 0, 1, 1], [], []>} : vector<16x8xf32>, vector<8x128xf32>, vector<16x128xf32> -> vector<16x128xf32>
    %8 = arith.addf %5, %7 : vector<16x128xf32>
    %c40 = arith.constant 40 : index
    %c0_8 = arith.constant 0 : index
    %9 = vector.load %arg1[%c40, %c0_8] : memref<128x128xf32, #tpu.memory_space<vmem>>, vector<1x128xf32>
    %10 = vector.broadcast %9 : vector<1x128xf32> to vector<16x128xf32>
    %11 = arith.addf %8, %10 : vector<16x128xf32>
    %12 = vector.extract_strided_slice %11 {offsets = [0, 0], sizes = [8, 128], strides = [1, 1]} : vector<16x128xf32> to vector<8x128xf32>
    %c64 = arith.constant 64 : index
    %c0_9 = arith.constant 0 : index
    %13 = vector.load %arg0[%c64, %c0_9] : memref<88x32xf32, #tpu.memory_space<vmem>>, vector<8x8xf32>
    %14 = vector.extract_strided_slice %12 {offsets = [0, 0], sizes = [8, 8], strides = [1, 1]} : vector<8x128xf32> to vector<8x8xf32>
    %15 = vector.extract_strided_slice %12 {offsets = [0, 32], sizes = [8, 8], strides = [1, 1]} : vector<8x128xf32> to vector<8x8xf32>
    %16 = vector.extract_strided_slice %12 {offsets = [0, 64], sizes = [8, 8], strides = [1, 1]} : vector<8x128xf32> to vector<8x8xf32>
    %cst_10 = arith.constant dense<0.000000e+00> : vector<8x8xf32>
    %17 = tpu.matmul %14, %15, %cst_10 {dimension_numbers = #tpu.dot_dimension_numbers<[1], [1], [0], [0], [0, 0, 1, 0], [], []>} : vector<8x8xf32>, vector<8x8xf32>, vector<8x8xf32> -> vector<8x8xf32>
    %18 = arith.addf %17, %13 : vector<8x8xf32>
    %cst_11 = arith.constant dense<0xFF800000> : vector<8xf32>
    %19 = vector.multi_reduction <maximumf>, %18, %cst_11 [1] : vector<8x8xf32> to vector<8xf32>
    %20 = vector.shape_cast %19 : vector<8xf32> to vector<8x1xf32>
    %21 = vector.broadcast %20 : vector<8x1xf32> to vector<8x8xf32>
    %22 = arith.subf %18, %21 : vector<8x8xf32>
    %23 = math.exp %22 : vector<8x8xf32>
    %cst_12 = arith.constant dense<0.000000e+00> : vector<8xf32>
    %24 = vector.multi_reduction <add>, %23, %cst_12 [1] : vector<8x8xf32> to vector<8xf32>
    %25 = vector.shape_cast %24 : vector<8xf32> to vector<8x1xf32>
    %cst_13 = arith.constant 9.99999971E-10 : f32
    %26 = vector.broadcast %cst_13 : f32 to vector<8x1xf32>
    %27 = arith.addf %25, %26 : vector<8x1xf32>
    %28 = tpu.reciprocal %27 {approx = true} : vector<8x1xf32> -> vector<8x1xf32>
    %29 = vector.broadcast %28 : vector<8x1xf32> to vector<8x8xf32>
    %30 = arith.mulf %23, %29 : vector<8x8xf32>
    %cst_14 = arith.constant dense<0.000000e+00> : vector<8x8xf32>
    %31 = tpu.matmul %30, %16, %cst_14 {dimension_numbers = #tpu.dot_dimension_numbers<[1], [0], [0], [1], [0, 0, 1, 1], [], []>} : vector<8x8xf32>, vector<8x8xf32>, vector<8x8xf32> -> vector<8x8xf32>
    %c48_15 = arith.constant 48 : index
    %c0_16 = arith.constant 0 : index
    %32 = vector.load %arg1[%c48_15, %c0_16] : memref<128x128xf32, #tpu.memory_space<vmem>>, vector<8x128xf32>
    %cst_17 = arith.constant dense<0.000000e+00> : vector<8x128xf32>
    %33 = tpu.matmul %31, %32, %cst_17 {dimension_numbers = #tpu.dot_dimension_numbers<[1], [0], [0], [1], [0, 0, 1, 1], [], []>} : vector<8x8xf32>, vector<8x128xf32>, vector<8x128xf32> -> vector<8x128xf32>
    %34 = vector.extract_strided_slice %12 {offsets = [0, 8], sizes = [8, 8], strides = [1, 1]} : vector<8x128xf32> to vector<8x8xf32>
    %35 = vector.extract_strided_slice %12 {offsets = [0, 40], sizes = [8, 8], strides = [1, 1]} : vector<8x128xf32> to vector<8x8xf32>
    %36 = vector.extract_strided_slice %12 {offsets = [0, 72], sizes = [8, 8], strides = [1, 1]} : vector<8x128xf32> to vector<8x8xf32>
    %cst_18 = arith.constant dense<0.000000e+00> : vector<8x8xf32>
    %37 = tpu.matmul %34, %35, %cst_18 {dimension_numbers = #tpu.dot_dimension_numbers<[1], [1], [0], [0], [0, 0, 1, 0], [], []>} : vector<8x8xf32>, vector<8x8xf32>, vector<8x8xf32> -> vector<8x8xf32>
    %38 = arith.addf %37, %13 : vector<8x8xf32>
    %cst_19 = arith.constant dense<0xFF800000> : vector<8xf32>
    %39 = vector.multi_reduction <maximumf>, %38, %cst_19 [1] : vector<8x8xf32> to vector<8xf32>
    %40 = vector.shape_cast %39 : vector<8xf32> to vector<8x1xf32>
    %41 = vector.broadcast %40 : vector<8x1xf32> to vector<8x8xf32>
    %42 = arith.subf %38, %41 : vector<8x8xf32>
    %43 = math.exp %42 : vector<8x8xf32>
    %cst_20 = arith.constant dense<0.000000e+00> : vector<8xf32>
    %44 = vector.multi_reduction <add>, %43, %cst_20 [1] : vector<8x8xf32> to vector<8xf32>
    %45 = vector.shape_cast %44 : vector<8xf32> to vector<8x1xf32>
    %cst_21 = arith.constant 9.99999971E-10 : f32
    %46 = vector.broadcast %cst_21 : f32 to vector<8x1xf32>
    %47 = arith.addf %45, %46 : vector<8x1xf32>
    %48 = tpu.reciprocal %47 {approx = true} : vector<8x1xf32> -> vector<8x1xf32>
    %49 = vector.broadcast %48 : vector<8x1xf32> to vector<8x8xf32>
    %50 = arith.mulf %43, %49 : vector<8x8xf32>
    %cst_22 = arith.constant dense<0.000000e+00> : vector<8x8xf32>
    %51 = tpu.matmul %50, %36, %cst_22 {dimension_numbers = #tpu.dot_dimension_numbers<[1], [0], [0], [1], [0, 0, 1, 1], [], []>} : vector<8x8xf32>, vector<8x8xf32>, vector<8x8xf32> -> vector<8x8xf32>
    %c56 = arith.constant 56 : index
    %c0_23 = arith.constant 0 : index
    %52 = vector.load %arg1[%c56, %c0_23] : memref<128x128xf32, #tpu.memory_space<vmem>>, vector<8x128xf32>
    %cst_24 = arith.constant dense<0.000000e+00> : vector<8x128xf32>
    %53 = tpu.matmul %51, %52, %cst_24 {dimension_numbers = #tpu.dot_dimension_numbers<[1], [0], [0], [1], [0, 0, 1, 1], [], []>} : vector<8x8xf32>, vector<8x128xf32>, vector<8x128xf32> -> vector<8x128xf32>
    %54 = arith.addf %33, %53 : vector<8x128xf32>
    %55 = vector.extract_strided_slice %12 {offsets = [0, 16], sizes = [8, 8], strides = [1, 1]} : vector<8x128xf32> to vector<8x8xf32>
    %56 = vector.extract_strided_slice %12 {offsets = [0, 48], sizes = [8, 8], strides = [1, 1]} : vector<8x128xf32> to vector<8x8xf32>
    %57 = vector.extract_strided_slice %12 {offsets = [0, 80], sizes = [8, 8], strides = [1, 1]} : vector<8x128xf32> to vector<8x8xf32>
    %cst_25 = arith.constant dense<0.000000e+00> : vector<8x8xf32>
    %58 = tpu.matmul %55, %56, %cst_25 {dimension_numbers = #tpu.dot_dimension_numbers<[1], [1], [0], [0], [0, 0, 1, 0], [], []>} : vector<8x8xf32>, vector<8x8xf32>, vector<8x8xf32> -> vector<8x8xf32>
    %59 = arith.addf %58, %13 : vector<8x8xf32>
    %cst_26 = arith.constant dense<0xFF800000> : vector<8xf32>
    %60 = vector.multi_reduction <maximumf>, %59, %cst_26 [1] : vector<8x8xf32> to vector<8xf32>
    %61 = vector.shape_cast %60 : vector<8xf32> to vector<8x1xf32>
    %62 = vector.broadcast %61 : vector<8x1xf32> to vector<8x8xf32>
    %63 = arith.subf %59, %62 : vector<8x8xf32>
    %64 = math.exp %63 : vector<8x8xf32>
    %cst_27 = arith.constant dense<0.000000e+00> : vector<8xf32>
    %65 = vector.multi_reduction <add>, %64, %cst_27 [1] : vector<8x8xf32> to vector<8xf32>
    %66 = vector.shape_cast %65 : vector<8xf32> to vector<8x1xf32>
    %cst_28 = arith.constant 9.99999971E-10 : f32
    %67 = vector.broadcast %cst_28 : f32 to vector<8x1xf32>
    %68 = arith.addf %66, %67 : vector<8x1xf32>
    %69 = tpu.reciprocal %68 {approx = true} : vector<8x1xf32> -> vector<8x1xf32>
    %70 = vector.broadcast %69 : vector<8x1xf32> to vector<8x8xf32>
    %71 = arith.mulf %64, %70 : vector<8x8xf32>
    %cst_29 = arith.constant dense<0.000000e+00> : vector<8x8xf32>
    %72 = tpu.matmul %71, %57, %cst_29 {dimension_numbers = #tpu.dot_dimension_numbers<[1], [0], [0], [1], [0, 0, 1, 1], [], []>} : vector<8x8xf32>, vector<8x8xf32>, vector<8x8xf32> -> vector<8x8xf32>
    %c64_30 = arith.constant 64 : index
    %c0_31 = arith.constant 0 : index
    %73 = vector.load %arg1[%c64_30, %c0_31] : memref<128x128xf32, #tpu.memory_space<vmem>>, vector<8x128xf32>
    %cst_32 = arith.constant dense<0.000000e+00> : vector<8x128xf32>
    %74 = tpu.matmul %72, %73, %cst_32 {dimension_numbers = #tpu.dot_dimension_numbers<[1], [0], [0], [1], [0, 0, 1, 1], [], []>} : vector<8x8xf32>, vector<8x128xf32>, vector<8x128xf32> -> vector<8x128xf32>
    %75 = arith.addf %54, %74 : vector<8x128xf32>
    %76 = vector.extract_strided_slice %12 {offsets = [0, 24], sizes = [8, 8], strides = [1, 1]} : vector<8x128xf32> to vector<8x8xf32>
    %77 = vector.extract_strided_slice %12 {offsets = [0, 56], sizes = [8, 8], strides = [1, 1]} : vector<8x128xf32> to vector<8x8xf32>
    %78 = vector.extract_strided_slice %12 {offsets = [0, 88], sizes = [8, 8], strides = [1, 1]} : vector<8x128xf32> to vector<8x8xf32>
    %cst_33 = arith.constant dense<0.000000e+00> : vector<8x8xf32>
    %79 = tpu.matmul %76, %77, %cst_33 {dimension_numbers = #tpu.dot_dimension_numbers<[1], [1], [0], [0], [0, 0, 1, 0], [], []>} : vector<8x8xf32>, vector<8x8xf32>, vector<8x8xf32> -> vector<8x8xf32>
    %80 = arith.addf %79, %13 : vector<8x8xf32>
    %cst_34 = arith.constant dense<0xFF800000> : vector<8xf32>
    %81 = vector.multi_reduction <maximumf>, %80, %cst_34 [1] : vector<8x8xf32> to vector<8xf32>
    %82 = vector.shape_cast %81 : vector<8xf32> to vector<8x1xf32>
    %83 = vector.broadcast %82 : vector<8x1xf32> to vector<8x8xf32>
    %84 = arith.subf %80, %83 : vector<8x8xf32>
    %85 = math.exp %84 : vector<8x8xf32>
    %cst_35 = arith.constant dense<0.000000e+00> : vector<8xf32>
    %86 = vector.multi_reduction <add>, %85, %cst_35 [1] : vector<8x8xf32> to vector<8xf32>
    %87 = vector.shape_cast %86 : vector<8xf32> to vector<8x1xf32>
    %cst_36 = arith.constant 9.99999971E-10 : f32
    %88 = vector.broadcast %cst_36 : f32 to vector<8x1xf32>
    %89 = arith.addf %87, %88 : vector<8x1xf32>
    %90 = tpu.reciprocal %89 {approx = true} : vector<8x1xf32> -> vector<8x1xf32>
    %91 = vector.broadcast %90 : vector<8x1xf32> to vector<8x8xf32>
    %92 = arith.mulf %85, %91 : vector<8x8xf32>
    %cst_37 = arith.constant dense<0.000000e+00> : vector<8x8xf32>
    %93 = tpu.matmul %92, %78, %cst_37 {dimension_numbers = #tpu.dot_dimension_numbers<[1], [0], [0], [1], [0, 0, 1, 1], [], []>} : vector<8x8xf32>, vector<8x8xf32>, vector<8x8xf32> -> vector<8x8xf32>
    %c72 = arith.constant 72 : index
    %c0_38 = arith.constant 0 : index
    %94 = vector.load %arg1[%c72, %c0_38] : memref<128x128xf32, #tpu.memory_space<vmem>>, vector<8x128xf32>
    %cst_39 = arith.constant dense<0.000000e+00> : vector<8x128xf32>
    %95 = tpu.matmul %93, %94, %cst_39 {dimension_numbers = #tpu.dot_dimension_numbers<[1], [0], [0], [1], [0, 0, 1, 1], [], []>} : vector<8x8xf32>, vector<8x128xf32>, vector<8x128xf32> -> vector<8x128xf32>
    %96 = arith.addf %75, %95 : vector<8x128xf32>
    %97 = vector.extract_strided_slice %11 {offsets = [8, 0], sizes = [8, 128], strides = [1, 1]} : vector<16x128xf32> to vector<8x128xf32>
    %c72_40 = arith.constant 72 : index
    %c0_41 = arith.constant 0 : index
    %98 = vector.load %arg0[%c72_40, %c0_41] : memref<88x32xf32, #tpu.memory_space<vmem>>, vector<8x8xf32>
    %99 = vector.extract_strided_slice %97 {offsets = [0, 0], sizes = [8, 8], strides = [1, 1]} : vector<8x128xf32> to vector<8x8xf32>
    %100 = vector.extract_strided_slice %97 {offsets = [0, 32], sizes = [8, 8], strides = [1, 1]} : vector<8x128xf32> to vector<8x8xf32>
    %101 = vector.extract_strided_slice %97 {offsets = [0, 64], sizes = [8, 8], strides = [1, 1]} : vector<8x128xf32> to vector<8x8xf32>
    %cst_42 = arith.constant dense<0.000000e+00> : vector<8x8xf32>
    %102 = tpu.matmul %99, %100, %cst_42 {dimension_numbers = #tpu.dot_dimension_numbers<[1], [1], [0], [0], [0, 0, 1, 0], [], []>} : vector<8x8xf32>, vector<8x8xf32>, vector<8x8xf32> -> vector<8x8xf32>
    %103 = arith.addf %102, %98 : vector<8x8xf32>
    %cst_43 = arith.constant dense<0xFF800000> : vector<8xf32>
    %104 = vector.multi_reduction <maximumf>, %103, %cst_43 [1] : vector<8x8xf32> to vector<8xf32>
    %105 = vector.shape_cast %104 : vector<8xf32> to vector<8x1xf32>
    %106 = vector.broadcast %105 : vector<8x1xf32> to vector<8x8xf32>
    %107 = arith.subf %103, %106 : vector<8x8xf32>
    %108 = math.exp %107 : vector<8x8xf32>
    %cst_44 = arith.constant dense<0.000000e+00> : vector<8xf32>
    %109 = vector.multi_reduction <add>, %108, %cst_44 [1] : vector<8x8xf32> to vector<8xf32>
    %110 = vector.shape_cast %109 : vector<8xf32> to vector<8x1xf32>
    %cst_45 = arith.constant 9.99999971E-10 : f32
    %111 = vector.broadcast %cst_45 : f32 to vector<8x1xf32>
    %112 = arith.addf %110, %111 : vector<8x1xf32>
    %113 = tpu.reciprocal %112 {approx = true} : vector<8x1xf32> -> vector<8x1xf32>
    %114 = vector.broadcast %113 : vector<8x1xf32> to vector<8x8xf32>
    %115 = arith.mulf %108, %114 : vector<8x8xf32>
    %cst_46 = arith.constant dense<0.000000e+00> : vector<8x8xf32>
    %116 = tpu.matmul %115, %101, %cst_46 {dimension_numbers = #tpu.dot_dimension_numbers<[1], [0], [0], [1], [0, 0, 1, 1], [], []>} : vector<8x8xf32>, vector<8x8xf32>, vector<8x8xf32> -> vector<8x8xf32>
    %c48_47 = arith.constant 48 : index
    %c0_48 = arith.constant 0 : index
    %117 = vector.load %arg1[%c48_47, %c0_48] : memref<128x128xf32, #tpu.memory_space<vmem>>, vector<8x128xf32>
    %cst_49 = arith.constant dense<0.000000e+00> : vector<8x128xf32>
    %118 = tpu.matmul %116, %117, %cst_49 {dimension_numbers = #tpu.dot_dimension_numbers<[1], [0], [0], [1], [0, 0, 1, 1], [], []>} : vector<8x8xf32>, vector<8x128xf32>, vector<8x128xf32> -> vector<8x128xf32>
    %119 = vector.extract_strided_slice %97 {offsets = [0, 8], sizes = [8, 8], strides = [1, 1]} : vector<8x128xf32> to vector<8x8xf32>
    %120 = vector.extract_strided_slice %97 {offsets = [0, 40], sizes = [8, 8], strides = [1, 1]} : vector<8x128xf32> to vector<8x8xf32>
    %121 = vector.extract_strided_slice %97 {offsets = [0, 72], sizes = [8, 8], strides = [1, 1]} : vector<8x128xf32> to vector<8x8xf32>
    %cst_50 = arith.constant dense<0.000000e+00> : vector<8x8xf32>
    %122 = tpu.matmul %119, %120, %cst_50 {dimension_numbers = #tpu.dot_dimension_numbers<[1], [1], [0], [0], [0, 0, 1, 0], [], []>} : vector<8x8xf32>, vector<8x8xf32>, vector<8x8xf32> -> vector<8x8xf32>
    %123 = arith.addf %122, %98 : vector<8x8xf32>
    %cst_51 = arith.constant dense<0xFF800000> : vector<8xf32>
    %124 = vector.multi_reduction <maximumf>, %123, %cst_51 [1] : vector<8x8xf32> to vector<8xf32>
    %125 = vector.shape_cast %124 : vector<8xf32> to vector<8x1xf32>
    %126 = vector.broadcast %125 : vector<8x1xf32> to vector<8x8xf32>
    %127 = arith.subf %123, %126 : vector<8x8xf32>
    %128 = math.exp %127 : vector<8x8xf32>
    %cst_52 = arith.constant dense<0.000000e+00> : vector<8xf32>
    %129 = vector.multi_reduction <add>, %128, %cst_52 [1] : vector<8x8xf32> to vector<8xf32>
    %130 = vector.shape_cast %129 : vector<8xf32> to vector<8x1xf32>
    %cst_53 = arith.constant 9.99999971E-10 : f32
    %131 = vector.broadcast %cst_53 : f32 to vector<8x1xf32>
    %132 = arith.addf %130, %131 : vector<8x1xf32>
    %133 = tpu.reciprocal %132 {approx = true} : vector<8x1xf32> -> vector<8x1xf32>
    %134 = vector.broadcast %133 : vector<8x1xf32> to vector<8x8xf32>
    %135 = arith.mulf %128, %134 : vector<8x8xf32>
    %cst_54 = arith.constant dense<0.000000e+00> : vector<8x8xf32>
    %136 = tpu.matmul %135, %121, %cst_54 {dimension_numbers = #tpu.dot_dimension_numbers<[1], [0], [0], [1], [0, 0, 1, 1], [], []>} : vector<8x8xf32>, vector<8x8xf32>, vector<8x8xf32> -> vector<8x8xf32>
    %c56_55 = arith.constant 56 : index
    %c0_56 = arith.constant 0 : index
    %137 = vector.load %arg1[%c56_55, %c0_56] : memref<128x128xf32, #tpu.memory_space<vmem>>, vector<8x128xf32>
    %cst_57 = arith.constant dense<0.000000e+00> : vector<8x128xf32>
    %138 = tpu.matmul %136, %137, %cst_57 {dimension_numbers = #tpu.dot_dimension_numbers<[1], [0], [0], [1], [0, 0, 1, 1], [], []>} : vector<8x8xf32>, vector<8x128xf32>, vector<8x128xf32> -> vector<8x128xf32>
    %139 = arith.addf %118, %138 : vector<8x128xf32>
    %140 = vector.extract_strided_slice %97 {offsets = [0, 16], sizes = [8, 8], strides = [1, 1]} : vector<8x128xf32> to vector<8x8xf32>
    %141 = vector.extract_strided_slice %97 {offsets = [0, 48], sizes = [8, 8], strides = [1, 1]} : vector<8x128xf32> to vector<8x8xf32>
    %142 = vector.extract_strided_slice %97 {offsets = [0, 80], sizes = [8, 8], strides = [1, 1]} : vector<8x128xf32> to vector<8x8xf32>
    %cst_58 = arith.constant dense<0.000000e+00> : vector<8x8xf32>
    %143 = tpu.matmul %140, %141, %cst_58 {dimension_numbers = #tpu.dot_dimension_numbers<[1], [1], [0], [0], [0, 0, 1, 0], [], []>} : vector<8x8xf32>, vector<8x8xf32>, vector<8x8xf32> -> vector<8x8xf32>
    %144 = arith.addf %143, %98 : vector<8x8xf32>
    %cst_59 = arith.constant dense<0xFF800000> : vector<8xf32>
    %145 = vector.multi_reduction <maximumf>, %144, %cst_59 [1] : vector<8x8xf32> to vector<8xf32>
    %146 = vector.shape_cast %145 : vector<8xf32> to vector<8x1xf32>
    %147 = vector.broadcast %146 : vector<8x1xf32> to vector<8x8xf32>
    %148 = arith.subf %144, %147 : vector<8x8xf32>
    %149 = math.exp %148 : vector<8x8xf32>
    %cst_60 = arith.constant dense<0.000000e+00> : vector<8xf32>
    %150 = vector.multi_reduction <add>, %149, %cst_60 [1] : vector<8x8xf32> to vector<8xf32>
    %151 = vector.shape_cast %150 : vector<8xf32> to vector<8x1xf32>
    %cst_61 = arith.constant 9.99999971E-10 : f32
    %152 = vector.broadcast %cst_61 : f32 to vector<8x1xf32>
    %153 = arith.addf %151, %152 : vector<8x1xf32>
    %154 = tpu.reciprocal %153 {approx = true} : vector<8x1xf32> -> vector<8x1xf32>
    %155 = vector.broadcast %154 : vector<8x1xf32> to vector<8x8xf32>
    %156 = arith.mulf %149, %155 : vector<8x8xf32>
    %cst_62 = arith.constant dense<0.000000e+00> : vector<8x8xf32>
    %157 = tpu.matmul %156, %142, %cst_62 {dimension_numbers = #tpu.dot_dimension_numbers<[1], [0], [0], [1], [0, 0, 1, 1], [], []>} : vector<8x8xf32>, vector<8x8xf32>, vector<8x8xf32> -> vector<8x8xf32>
    %c64_63 = arith.constant 64 : index
    %c0_64 = arith.constant 0 : index
    %158 = vector.load %arg1[%c64_63, %c0_64] : memref<128x128xf32, #tpu.memory_space<vmem>>, vector<8x128xf32>
    %cst_65 = arith.constant dense<0.000000e+00> : vector<8x128xf32>
    %159 = tpu.matmul %157, %158, %cst_65 {dimension_numbers = #tpu.dot_dimension_numbers<[1], [0], [0], [1], [0, 0, 1, 1], [], []>} : vector<8x8xf32>, vector<8x128xf32>, vector<8x128xf32> -> vector<8x128xf32>
    %160 = arith.addf %139, %159 : vector<8x128xf32>
    %161 = vector.extract_strided_slice %97 {offsets = [0, 24], sizes = [8, 8], strides = [1, 1]} : vector<8x128xf32> to vector<8x8xf32>
    %162 = vector.extract_strided_slice %97 {offsets = [0, 56], sizes = [8, 8], strides = [1, 1]} : vector<8x128xf32> to vector<8x8xf32>
    %163 = vector.extract_strided_slice %97 {offsets = [0, 88], sizes = [8, 8], strides = [1, 1]} : vector<8x128xf32> to vector<8x8xf32>
    %cst_66 = arith.constant dense<0.000000e+00> : vector<8x8xf32>
    %164 = tpu.matmul %161, %162, %cst_66 {dimension_numbers = #tpu.dot_dimension_numbers<[1], [1], [0], [0], [0, 0, 1, 0], [], []>} : vector<8x8xf32>, vector<8x8xf32>, vector<8x8xf32> -> vector<8x8xf32>
    %165 = arith.addf %164, %98 : vector<8x8xf32>
    %cst_67 = arith.constant dense<0xFF800000> : vector<8xf32>
    %166 = vector.multi_reduction <maximumf>, %165, %cst_67 [1] : vector<8x8xf32> to vector<8xf32>
    %167 = vector.shape_cast %166 : vector<8xf32> to vector<8x1xf32>
    %168 = vector.broadcast %167 : vector<8x1xf32> to vector<8x8xf32>
    %169 = arith.subf %165, %168 : vector<8x8xf32>
    %170 = math.exp %169 : vector<8x8xf32>
    %cst_68 = arith.constant dense<0.000000e+00> : vector<8xf32>
    %171 = vector.multi_reduction <add>, %170, %cst_68 [1] : vector<8x8xf32> to vector<8xf32>
    %172 = vector.shape_cast %171 : vector<8xf32> to vector<8x1xf32>
    %cst_69 = arith.constant 9.99999971E-10 : f32
    %173 = vector.broadcast %cst_69 : f32 to vector<8x1xf32>
    %174 = arith.addf %172, %173 : vector<8x1xf32>
    %175 = tpu.reciprocal %174 {approx = true} : vector<8x1xf32> -> vector<8x1xf32>
    %176 = vector.broadcast %175 : vector<8x1xf32> to vector<8x8xf32>
    %177 = arith.mulf %170, %176 : vector<8x8xf32>
    %cst_70 = arith.constant dense<0.000000e+00> : vector<8x8xf32>
    %178 = tpu.matmul %177, %163, %cst_70 {dimension_numbers = #tpu.dot_dimension_numbers<[1], [0], [0], [1], [0, 0, 1, 1], [], []>} : vector<8x8xf32>, vector<8x8xf32>, vector<8x8xf32> -> vector<8x8xf32>
    %c72_71 = arith.constant 72 : index
    %c0_72 = arith.constant 0 : index
    %179 = vector.load %arg1[%c72_71, %c0_72] : memref<128x128xf32, #tpu.memory_space<vmem>>, vector<8x128xf32>
    %cst_73 = arith.constant dense<0.000000e+00> : vector<8x128xf32>
    %180 = tpu.matmul %178, %179, %cst_73 {dimension_numbers = #tpu.dot_dimension_numbers<[1], [0], [0], [1], [0, 0, 1, 1], [], []>} : vector<8x8xf32>, vector<8x128xf32>, vector<8x128xf32> -> vector<8x128xf32>
    %181 = arith.addf %160, %180 : vector<8x128xf32>
    %182 = tpu.concatenate %96, %181 in 0 : vector<8x128xf32>, vector<8x128xf32> -> vector<16x128xf32>
    %c80 = arith.constant 80 : index
    %c0_74 = arith.constant 0 : index
    %183 = vector.load %arg1[%c80, %c0_74] : memref<128x128xf32, #tpu.memory_space<vmem>>, vector<1x128xf32>
    %184 = vector.broadcast %183 : vector<1x128xf32> to vector<16x128xf32>
    %185 = arith.addf %182, %184 : vector<16x128xf32>
    %c80_75 = arith.constant 80 : index
    %c0_76 = arith.constant 0 : index
    %186 = vector.load %arg0[%c80_75, %c0_76] : memref<88x32xf32, #tpu.memory_space<vmem>>, vector<2x16xf32>
    %cst_77 = arith.constant dense<0.000000e+00> : vector<2x128xf32>
    %187 = tpu.matmul %186, %185, %cst_77 {dimension_numbers = #tpu.dot_dimension_numbers<[1], [0], [0], [1], [0, 0, 1, 1], [], []>} : vector<2x16xf32>, vector<16x128xf32>, vector<2x128xf32> -> vector<2x128xf32>
    %188 = vector.extract_strided_slice %187 {offsets = [0, 0], sizes = [2, 32], strides = [1, 1]} : vector<2x128xf32> to vector<2x32xf32>
    %c88 = arith.constant 88 : index
    %c0_78 = arith.constant 0 : index
    %189 = vector.load %arg1[%c88, %c0_78] : memref<128x128xf32, #tpu.memory_space<vmem>>, vector<32x128xf32>
    %cst_79 = arith.constant dense<0.000000e+00> : vector<2x128xf32>
    %190 = tpu.matmul %188, %189, %cst_79 {dimension_numbers = #tpu.dot_dimension_numbers<[1], [0], [0], [1], [0, 0, 1, 1], [], []>} : vector<2x32xf32>, vector<32x128xf32>, vector<2x128xf32> -> vector<2x128xf32>
    %c120 = arith.constant 120 : index
    %c0_80 = arith.constant 0 : index
    %191 = vector.load %arg1[%c120, %c0_80] : memref<128x128xf32, #tpu.memory_space<vmem>>, vector<1x128xf32>
    %192 = vector.broadcast %191 : vector<1x128xf32> to vector<2x128xf32>
    %193 = arith.addf %190, %192 : vector<2x128xf32>
    %194 = math.tanh %193 : vector<2x128xf32>
    %c0_81 = arith.constant 0 : index
    %c0_82 = arith.constant 0 : index
    %195 = vector.load %arg2[%c0_81, %c0_82] : memref<2x128xf32, #tpu.memory_space<vmem>>, vector<2x128xf32>
    tpu.vector_store %arg2[%c0_81, %c0_82], %194 {strides = array<i32>} : memref<2x128xf32, #tpu.memory_space<vmem>>, vector<2x128xf32>,
    return
  }
}

</mosaic_0001>

<bundles_post_ra>
// kernel: div.3
= control target key start
LH: loop header
LB: loop body
LE: loop exit
PB: predicated region body
PF: predicated region fallthrough
CT: control target
= control target key end

     0   :  { %s37_s0 = inlined_call_operand.vmem [shape: f32[16], index: 0, kind: input, shape index: {}]   ;;  %s38_s1 = inlined_call_operand.vmem [shape: f32[16], index: 1, kind: input, shape index: {}]   ;;  %s39_s2 = inlined_call_operand.vmem [shape: f32[16], index: 2, kind: output, shape index: {}]  }
   0x1   :  { %v4_v0 = vld [vmem:[%s38_s1] sm:$0x1] }
   0x2   :  { %11 = vrcp.f32 %v4_v0  ;;  %v3_v1 = vld [vmem:[%s37_s0] sm:$0x1] }
   0xf   :  { %v12_v2 = vpop.eup %11 }
  0x10   :  { %v8_v3 = vmul.f32 %v12_v2, %v3_v1 }
  0x12   :  { %10 = vst [vmem:[%s39_s2] sm:$0x1] %v8_v3 }

// kernel: model_actor_forward.1
= control target key start
LH: loop header
LB: loop body
LE: loop exit
PB: predicated region body
PF: predicated region fallthrough
CT: control target
= control target key end

     0   :  { %vm18_vm0 = vcmask 261120   ;;  %s3060_s0 = inlined_call_operand.vmem [shape: f32[88,32], index: 0, kind: input, shape index: {}]   ;;  %s3061_s1 = inlined_call_operand.vmem [shape: f32[128,128], index: 1, kind: input, shape index: {}]   ;;  %s3062_s2 = inlined_call_operand.hbm [shape: f32[2,128], index: 2, kind: output, shape index: {}]  }
   0x1   :  { %v17_v0 = vld [vmem:[%s3060_s0 + $0x28] sm:$0xff]  ;;  %v16_v1 = vld [vmem:[%s3060_s0 + $0x20] sm:$0xff]  ;;  %v15_v2 = vld [vmem:[%s3060_s0 + $0x18] sm:$0xff] }
   0x2   :  { %2491 = vmatprep.subr.mxu0 %v17_v0  ;;  %v12_v3 = vld [vmem:[%s3060_s0] sm:$0xff]  ;;  %v105_v4 = vld [vmem:[%s3061_s1 + $0x18] sm:$0xff]  ;;  %v104_v5 = vld [vmem:[%s3061_s1 + $0x10] sm:$0xff] }
   0x3   :  { %2492 = vmatpush3.msra.mxu0 %v17_v0  ;;  %2499 = vmatprep.mubr.msk.f32.mxu0 %vm18_vm0, %v12_v3 }
   0x4   :  { %7 = vsyncpa [#allocation3], 0  ;;  %2493 = vmatprep.subr.mxu0 %v16_v1  ;;  %2507 = vmatprep.subr.mxu1 %v105_v4  ;;  %v14_v6 = vld [vmem:[%s3060_s0 + $0x10] sm:$0xff]  ;;  %v13_v7 = vld [vmem:[%s3060_s0 + $0x8] sm:$0xff]  ;;  %vm107_vm1 = vcmask 64512   ;;  %v2726_v15 = vmov 0.0  }
   0x5   :  { %2494 = vmatpush3.msra.mxu0 %v16_v1  ;;  %2508 = vmatpush3.msra.mxu1 %v105_v4  ;;  %v106_v8 = vld [vmem:[%s3061_s1 + $0x20] sm:$0xff]  ;;  %v103_v9 = vld [vmem:[%s3061_s1 + $0x8] sm:$0xff]  ;;  %v100_v10 = vld [vmem:[%s3060_s0 + $0x30] sm:$0xff]  ;;  %vm2727_vm2 = vmmov 0   ;;  %s2728_s9 = smov 120   ;;  %s2729_s10 = smov 96  }
   0x6   :  { %2495 = vmatprep.subr.mxu0 %v15_v2  ;;  %2509 = vmatprep.subr.mxu1 %v104_v5  ;;  %v101_v11 = vld [vmem:[%s3060_s0 + $0x38] sm:$0xff]  ;;  %v102_v12 = vld [vmem:[%s3061_s1] sm:$0xff]  ;;  %v2383_v18 = vld [vmem:[%s3061_s1 + $0x28] ss:$0 sm:$0xff]  ;;  %s2730_s11 = smov 88   ;;  %s2731_s14 = smov 56  }
   0x7   :  { %2496 = vmatpush3.msra.mxu0 %v15_v2  ;;  %2510 = vmatpush3.msra.mxu1 %v104_v5  ;;  %v2833_v28 = vld [vmem:[%s3060_s0 + $0x40] sm:$0xff]  ;;  %s2732_s15 = smov 64   ;;  %s2733_s16 = smov 80   ;;  %v2860_v57 = vld [vmem:[%s3061_s1 + $0x30] sm:$0xff]  ;;  %v2866_v58 = vld [vmem:[%s3061_s1 + $0x38] sm:$0xff]  ;;  %vm2205_vm3 = vcmask 130048  }
   0x8   :  { %2497 = vmatprep.subr.mxu0 %v14_v6  ;;  %2511 = vmatprep.subr.mxu1 %v103_v9  ;;  %s2734_s17 = smov 112   ;;  %s2735_s22 = smov 72  }
   0x9   :  { %2498 = vmatpush3.msra.mxu0 %v14_v6  ;;  %2512 = vmatpush3.msra.mxu1 %v103_v9  ;;  %s2736_s23 = smov 104   ;;  %s2737_s24 = smov 48  }
   0xa   :  { %2500 = vmatmul.mubr.msk.f32.vlgmr.msra.gmra.mxu0 %vm18_vm0, %v13_v7  ;;  %2502 = vmatprep.subr.mxu0 %v106_v8  ;;  %s2738_s27 = smov 40  }
   0xb   :  { %2503 = vmatpush3.msra.mxu0 %v106_v8  ;;  %2504 = vmatprep.mubr.msk.f32.mxu0 %vm107_vm1, %v100_v10 }
   0xc   :  { %2513 = vmatprep.subr.mxu1 %v102_v12  ;;  %2518 = vmatprep.subr.mxu0 %v2726_v15 }
   0xd   :  { %2514 = vmatpush3.msra.mxu1 %v102_v12 }
   0xe   :  { %2505 = vmatmul.mubr.msk.f32.vlgmr.msra.gmra.mxu0 %vm107_vm1, %v101_v11  ;;  %2523 = vmatprep.subr.mxu1 %v2726_v15 }
   0xf   :  { %2520 = vmatprep.mubr.msk.f32.mxu0 %vm2727_vm2, %v2726_v15 }
  0xca   :  { %v2501_v13 = vpop.f32.mrf.mxu0 }
  0xcc   :  { %v91_v14 = vpop.f32.mrf.mxu0 }
  0xcd   :  { %2515 = vmatprep.mubr.msk.f32.mxu1 %vm18_vm0, %v91_v14 }
  0xce   :  { %2516 = vmatmul.mubr.msk.f32.vlgmr.msra.gmra.mxu1 %vm18_vm0, %v2501_v13  ;;  %v2506_v16 = vpop.f32.mrf.mxu0 }
  0xcf   :  { %2525 = vmatprep.mubr.msk.f32.mxu1 %vm2727_vm2, %v2726_v15 }
  0xd0   :  { %v180_v20 = vpop.f32.mrf.mxu0 }
 0x18e   :  { %v2517_v17 = vpop.f32.mrf.mxu1 }
 0x18f   :  { %v267_v19 = vadd.f32 %v2517_v17, %v2506_v16 }
 0x190   :  { %v261_v21 = vpop.f32.mrf.mxu1 }
 0x191   :  { %v2809_v22 = vadd.f32 %v2383_v18, %v267_v19  ;;  %v262_v23 = vadd.f32 %v261_v21, %v180_v20 }
 0x193   :  { %v2811_v24 = vadd.f32 %v2383_v18, %v262_v23 }
 0x195   :  { %444 = vrot.lane.b32.xlu1 %v2811_v24, %s2728_s9  ;;  %279 = vrot.lane.b32.xlu0 %v2811_v24, %s2729_s10 }
 0x199   :  { %446 = vrot.lane.b32.xlu0 %v2811_v24, %s2730_s11 }
 0x207   :  { %v280_v25 = vpop.permute.xlu0 %279  ;;  %v445_v27 = vpop.permute.xlu1 %444 }
 0x208   :  { %2519 = vmatpush3.xpose.msk.msra.mxu0 %vm107_vm1, %v280_v25  ;;  %v2905_v25 = vld [vmem:[%s3061_s1 + $0x40] sm:$0xff] }
 0x209   :  { %2528 = vmatprep.subr.mxu0 %v2726_v15 }
 0x20b   :  { %2521 = vmatmul.mubr.msk.f32.vlgmr.msra.gmra.mxu0 %vm107_vm1, %v2811_v24  ;;  %v447_v26 = vpop.permute.xlu0 %446 }
 0x20c   :  { %2529 = vmatpush3.xpose.msk.msra.mxu0 %vm107_vm1, %v447_v26  ;;  %2530 = vmatprep.mubr.msk.f32.mxu0 %vm2727_vm2, %v2726_v15 }
 0x20d   :  { %2538 = vmatprep.subr.mxu0 %v2726_v15 }
 0x20f   :  { %2531 = vmatmul.mubr.msk.f32.vlgmr.msra.gmra.mxu0 %vm107_vm1, %v445_v27 }
 0x210   :  { %2540 = vmatprep.mubr.msk.f32.mxu0 %vm2727_vm2, %v2726_v15  ;;  %2539 = vmatpush3.msra.mxu0 %v2866_v58 }
 0x211   :  { %2548 = vmatprep.subr.mxu0 %v2726_v15 }
 0x2cb   :  { %v351_v29 = vpop.f32.mrf.mxu0 }
 0x2cc   :  { %v352_v30 = vadd.f32 %v351_v29, %v2833_v28 }
 0x2cd   :  { %v2522_v31 = vpop.f32.mrf.mxu0 }
 0x2ce   :  { %v355_v32 = vsel %vm107_vm1, %v352_v30, -inf }
 0x2cf   :  { %356 = vmax.xlane.f32.xlu1 %v355_v32  ;;  %v518_v33 = vpop.f32.mrf.mxu0 }
 0x2d0   :  { %v519_v34 = vadd.f32 %v518_v33, %v2833_v28 }
 0x2d1   :  { %v2532_v35 = vpop.f32.mrf.mxu0 }
 0x2d2   :  { %v522_v36 = vsel %vm107_vm1, %v519_v34, -inf }
 0x2d3   :  { %523 = vmax.xlane.f32.xlu0 %v522_v36 }
 0x358   :  { %v357_v37 = vpop.xlane.xlu1 %356 }
 0x359   :  { %v358_v38 = vsub.f32 %v352_v30, %v357_v37 }
 0x35b   :  { %v359_v39 = vmul.f32 1.442695, %v358_v38 }
 0x35c   :  { %v524_v40 = vpop.xlane.xlu0 %523 }
 0x35d   :  { %2670 = vpow2.f32 %v359_v39  ;;  %v525_v41 = vsub.f32 %v519_v34, %v524_v40 }
 0x35f   :  { %v526_v42 = vmul.f32 1.442695, %v525_v41 }
 0x361   :  { %2672 = vpow2.f32 %v526_v42 }
 0x36a   :  { %v2671_v43 = vpop.eup %2670 }
 0x36b   :  { %v361_v44 = vsel %vm107_vm1, %v2671_v43, 0.0 }
 0x36c   :  { %362 = vadd.xlane.f32.xlu0 %v361_v44 }
 0x36e   :  { %v2673_v45 = vpop.eup %2672 }
 0x36f   :  { %v528_v46 = vsel %vm107_vm1, %v2673_v45, 0.0 }
 0x370   :  { %529 = vadd.xlane.f32.xlu1 %v528_v46 }
 0x381   :  { %534 = vrot.lane.b32.xlu1 %v2811_v24, %s2731_s14 }
 0x382   :  { %367 = vrot.lane.b32.xlu0 %v2811_v24, %s2732_s15 }
 0x385   :  { %759 = vrot.lane.b32.xlu1 %v2811_v24, %s2733_s16 }
 0x386   :  { %757 = vrot.lane.b32.xlu0 %v2811_v24, %s2734_s17 }
 0x3f5   :  { %v363_v47 = vpop.xlane.xlu0 %362 }
 0x3f6   :  { %v364_v48 = vadd.f32 1e-09, %v363_v47  ;;  %v2944_v47 = vld [vmem:[%s3061_s1 + $0x48] sm:$0xff] }
 0x3f8   :  { %2674 = vrcp.f32 %v364_v48 }
 0x3f9   :  { %v530_v49 = vpop.xlane.xlu1 %529  ;;  %v368_v50 = vpop.permute.xlu0 %367 }
 0x3fa   :  { %v531_v51 = vadd.f32 1e-09, %v530_v49  ;;  %2524 = vmatpush3.msra.mxu1 %v368_v50  ;;  %v2952_v50 = vld [vmem:[%s3060_s0 + $0x48] sm:$0xff] }
 0x3fb   :  { %2533 = vmatprep.subr.mxu1 %v2726_v15 }
 0x3fc   :  { %2676 = vrcp.f32 %v531_v51 }
 0x3fd   :  { %v535_v54 = vpop.permute.xlu1 %534  ;;  %v758_v0 = vpop.permute.xlu0 %757 }
 0x401   :  { %v760_v62 = vpop.permute.xlu1 %759 }
 0x405   :  { %v2675_v52 = vpop.eup %2674 }
 0x406   :  { %v366_v53 = vmul.f32 %v2675_v52, %v2671_v43 }
 0x408   :  { %2526 = vmatmul.mubr.msk.f32.vlgmr.msra.gmra.mxu1 %vm107_vm1, %v366_v53 }
 0x409   :  { %v2677_v55 = vpop.eup %2676  ;;  %2534 = vmatpush3.msra.mxu1 %v535_v54  ;;  %2535 = vmatprep.mubr.msk.f32.mxu1 %vm2727_vm2, %v2726_v15 }
 0x40a   :  { %v533_v56 = vmul.f32 %v2677_v55, %v2673_v45  ;;  %2543 = vmatprep.subr.mxu1 %v2726_v15 }
 0x40c   :  { %2536 = vmatmul.mubr.msk.f32.vlgmr.msra.gmra.mxu1 %vm107_vm1, %v533_v56 }
 0x40d   :  { %2545 = vmatprep.mubr.msk.f32.mxu1 %vm2727_vm2, %v2726_v15  ;;  %2544 = vmatpush3.msra.mxu1 %v2860_v57 }
 0x40e   :  { %2553 = vmatprep.subr.mxu1 %v2726_v15 }
 0x4c8   :  { %v439_v59 = vpop.f32.mrf.mxu1 }
 0x4c9   :  { %2546 = vmatmul.mubr.msk.f32.vlgmr.msra.gmra.mxu1 %vm107_vm1, %v439_v59 }
 0x4ca   :  { %v2527_v60 = vpop.f32.mrf.mxu1  ;;  %2555 = vmatprep.mubr.msk.f32.mxu1 %vm2727_vm2, %v2726_v15 }
 0x4cc   :  { %v606_v61 = vpop.f32.mrf.mxu1 }
 0x4cd   :  { %2541 = vmatmul.mubr.msk.f32.vlgmr.msra.gmra.mxu0 %vm107_vm1, %v606_v61 }
 0x4ce   :  { %2549 = vmatpush3.xpose.msk.msra.mxu0 %vm107_vm1, %v760_v62  ;;  %v2537_v63 = vpop.f32.mrf.mxu1  ;;  %2550 = vmatprep.mubr.msk.f32.mxu0 %vm2727_vm2, %v2726_v15 }
 0x4cf   :  { %2558 = vmatprep.subr.mxu0 %v2726_v15 }
 0x4d1   :  { %2551 = vmatmul.mubr.msk.f32.vlgmr.msra.gmra.mxu0 %vm107_vm1, %v758_v0 }
 0x4d2   :  { %2560 = vmatprep.mubr.msk.f32.mxu0 %vm2727_vm2, %v2726_v15  ;;  %2559 = vmatpush3.msra.mxu0 %v2905_v25 }
 0x4d3   :  { %2568 = vmatprep.subr.mxu0 %v2726_v15 }
 0x589   :  { %v753_v1 = vpop.f32.mrf.mxu1 }
 0x58b   :  { %v2547_v2 = vpop.f32.mrf.mxu1 }
 0x58d   :  { %v680_v3 = vpop.f32.mrf.mxu0 }
 0x58e   :  { %v2882_v4 = vadd.f32 %v753_v1, %v680_v3 }
 0x58f   :  { %v2542_v5 = vpop.f32.mrf.mxu0 }
 0x591   :  { %v831_v6 = vpop.f32.mrf.mxu0 }
 0x592   :  { %v832_v7 = vadd.f32 %v831_v6, %v2833_v28 }
 0x593   :  { %v2552_v8 = vpop.f32.mrf.mxu0 }
 0x594   :  { %v835_v9 = vsel %vm107_vm1, %v832_v7, -inf }
 0x595   :  { %836 = vmax.xlane.f32.xlu1 %v835_v9 }
 0x5a6   :  { %1000 = vrot.lane.b32.xlu1 %v2811_v24, %s2735_s22 }
 0x5aa   :  { %998 = vrot.lane.b32.xlu1 %v2811_v24, %s2736_s23 }
 0x61e   :  { %v837_v10 = vpop.xlane.xlu1 %836 }
 0x61f   :  { %v838_v11 = vsub.f32 %v832_v7, %v837_v10 }
 0x621   :  { %v839_v12 = vmul.f32 1.442695, %v838_v11 }
 0x622   :  { %v1001_v20 = vpop.permute.xlu1 %1000 }
 0x623   :  { %2678 = vpow2.f32 %v839_v12 }
 0x626   :  { %v999_v23 = vpop.permute.xlu1 %998 }
 0x630   :  { %v2679_v13 = vpop.eup %2678 }
 0x631   :  { %v841_v14 = vsel %vm107_vm1, %v2679_v13, 0.0 }
 0x632   :  { %842 = vadd.xlane.f32.xlu0 %v841_v14 }
 0x648   :  { %847 = vrot.lane.b32.xlu0 %v2811_v24, %s2737_s24 }
 0x6bb   :  { %v843_v16 = vpop.xlane.xlu0 %842 }
 0x6bc   :  { %v844_v17 = vadd.f32 1e-09, %v843_v16 }
 0x6be   :  { %2680 = vrcp.f32 %v844_v17 }
 0x6bf   :  { %v848_v18 = vpop.permute.xlu0 %847 }
 0x6c0   :  { %2554 = vmatpush3.msra.mxu1 %v848_v18 }
 0x6c1   :  { %2563 = vmatprep.subr.mxu1 %v2726_v15 }
 0x6cb   :  { %v2681_v19 = vpop.eup %2680 }
 0x6cc   :  { %v846_v21 = vmul.f32 %v2681_v19, %v2679_v13 }
 0x6ce   :  { %2556 = vmatmul.mubr.msk.f32.vlgmr.msra.gmra.mxu1 %vm107_vm1, %v846_v21 }
 0x6cf   :  { %2564 = vmatpush3.xpose.msk.msra.mxu1 %vm107_vm1, %v1001_v20  ;;  %2565 = vmatprep.mubr.msk.f32.mxu1 %vm2727_vm2, %v2726_v15 }
 0x6d0   :  { %2573 = vmatprep.subr.mxu1 %v2726_v15 }
 0x6d2   :  { %2566 = vmatmul.mubr.msk.f32.vlgmr.msra.gmra.mxu1 %vm107_vm1, %v999_v23 }
 0x6d3   :  { %2575 = vmatprep.mubr.msk.f32.mxu1 %vm2727_vm2, %v2726_v15  ;;  %2574 = vmatpush3.msra.mxu1 %v2944_v47 }
 0x6d4   :  { %2583 = vmatprep.subr.mxu1 %v2726_v15 }
 0x78e   :  { %v919_v26 = vpop.f32.mrf.mxu1 }
 0x78f   :  { %2561 = vmatmul.mubr.msk.f32.vlgmr.msra.gmra.mxu0 %vm107_vm1, %v919_v26 }
 0x790   :  { %v2557_v27 = vpop.f32.mrf.mxu1  ;;  %2570 = vmatprep.mubr.msk.f32.mxu0 %vm2727_vm2, %v2726_v15 }
 0x792   :  { %v1072_v29 = vpop.f32.mrf.mxu1 }
 0x793   :  { %v1073_v30 = vadd.f32 %v1072_v29, %v2833_v28 }
 0x794   :  { %v2567_v31 = vpop.f32.mrf.mxu1 }
 0x795   :  { %v1076_v32 = vsel %vm107_vm1, %v1073_v30, -inf }
 0x796   :  { %1077 = vmax.xlane.f32.xlu0 %v1076_v32 }
 0x7ac   :  { %1088 = vrot.lane.b32.xlu0 %v2811_v24, %s2738_s27 }
 0x7b0   :  { %1407 = vrot.lane.b32.xlu0 %v2809_v22, %s2730_s11 }
 0x81f   :  { %v1078_v33 = vpop.xlane.xlu0 %1077 }
 0x820   :  { %v1079_v34 = vsub.f32 %v1073_v30, %v1078_v33 }
 0x822   :  { %v1080_v35 = vmul.f32 1.442695, %v1079_v34 }
 0x823   :  { %v1089_v36 = vpop.permute.xlu0 %1088 }
 0x824   :  { %2682 = vpow2.f32 %v1080_v35  ;;  %2569 = vmatpush3.msra.mxu0 %v1089_v36 }
 0x825   :  { %2578 = vmatprep.subr.mxu0 %v2726_v15 }
 0x827   :  { %v1408_v45 = vpop.permute.xlu0 %1407 }
 0x831   :  { %v2683_v28 = vpop.eup %2682 }
 0x832   :  { %v1082_v37 = vsel %vm107_vm1, %v2683_v28, 0.0 }
 0x833   :  { %1083 = vadd.xlane.f32.xlu1 %v1082_v37 }
 0x844   :  { %1241 = vrot.lane.b32.xlu1 %v2809_v22, %s2729_s10 }
 0x848   :  { %1405 = vrot.lane.b32.xlu1 %v2809_v22, %s2728_s9 }
 0x84f   :  { %v993_v24 = vpop.f32.mrf.mxu0 }
 0x850   :  { %v997_v38 = vadd.f32 %v993_v24, %v2882_v4 }
 0x851   :  { %v2562_v39 = vpop.f32.mrf.mxu0 }
 0x8bc   :  { %v1084_v40 = vpop.xlane.xlu1 %1083 }
 0x8bd   :  { %v1085_v41 = vadd.f32 1e-09, %v1084_v40 }
 0x8bf   :  { %2684 = vrcp.f32 %v1085_v41 }
 0x8c0   :  { %v1242_v44 = vpop.permute.xlu1 %1241 }
 0x8c4   :  { %v1406_v46 = vpop.permute.xlu1 %1405 }
 0x8cc   :  { %v2685_v42 = vpop.eup %2684 }
 0x8cd   :  { %v1087_v43 = vmul.f32 %v2685_v42, %v2683_v28 }
 0x8cf   :  { %2571 = vmatmul.mubr.msk.f32.vlgmr.msra.gmra.mxu0 %vm107_vm1, %v1087_v43 }
 0x8d0   :  { %2579 = vmatpush3.xpose.msk.msra.mxu0 %vm107_vm1, %v1242_v44  ;;  %2580 = vmatprep.mubr.msk.f32.mxu0 %vm2727_vm2, %v2726_v15 }
 0x8d1   :  { %2588 = vmatprep.subr.mxu0 %v2726_v15 }
 0x8d3   :  { %2581 = vmatmul.mubr.msk.f32.vlgmr.msra.gmra.mxu0 %vm107_vm1, %v2809_v22 }
 0x8d4   :  { %2589 = vmatpush3.xpose.msk.msra.mxu0 %vm107_vm1, %v1408_v45  ;;  %2590 = vmatprep.mubr.msk.f32.mxu0 %vm2727_vm2, %v2726_v15 }
 0x8d5   :  { %2598 = vmatprep.subr.mxu0 %v2726_v15 }
 0x8d7   :  { %2591 = vmatmul.mubr.msk.f32.vlgmr.msra.gmra.mxu0 %vm107_vm1, %v1406_v46 }
 0x8d8   :  { %2599 = vmatpush3.msra.mxu0 %v2866_v58  ;;  %2600 = vmatprep.mubr.msk.f32.mxu0 %vm2727_vm2, %v2726_v15 }
 0x8d9   :  { %2608 = vmatprep.subr.mxu0 %v2726_v15 }
 0x98f   :  { %v1160_v48 = vpop.f32.mrf.mxu0 }
 0x990   :  { %2576 = vmatmul.mubr.msk.f32.vlgmr.msra.gmra.mxu1 %vm107_vm1, %v1160_v48 }
 0x991   :  { %v2572_v49 = vpop.f32.mrf.mxu0  ;;  %2585 = vmatprep.mubr.msk.f32.mxu1 %vm2727_vm2, %v2726_v15 }
 0x993   :  { %v1313_v51 = vpop.f32.mrf.mxu0 }
 0x994   :  { %v1314_v52 = vadd.f32 %v1313_v51, %v2952_v50 }
 0x995   :  { %v2582_v53 = vpop.f32.mrf.mxu0 }
 0x996   :  { %v1317_v54 = vsel %vm107_vm1, %v1314_v52, -inf }
 0x997   :  { %1318 = vmax.xlane.f32.xlu0 %v1317_v54  ;;  %v1479_v55 = vpop.f32.mrf.mxu0 }
 0x998   :  { %v1480_v56 = vadd.f32 %v1479_v55, %v2952_v50 }
 0x999   :  { %v2592_v58 = vpop.f32.mrf.mxu0 }
 0x99a   :  { %v1483_v59 = vsel %vm107_vm1, %v1480_v56, -inf }
 0x99b   :  { %1484 = vmax.xlane.f32.xlu1 %v1483_v59 }
 0x9ac   :  { %1329 = vrot.lane.b32.xlu1 %v2809_v22, %s2732_s15 }
 0x9b0   :  { %1719 = vrot.lane.b32.xlu1 %v2809_v22, %s2733_s16 }
 0x9b4   :  { %1717 = vrot.lane.b32.xlu1 %v2809_v22, %s2734_s17 }
 0xa20   :  { %v1319_v60 = vpop.xlane.xlu0 %1318 }
 0xa21   :  { %v1320_v61 = vsub.f32 %v1314_v52, %v1319_v60 }
 0xa23   :  { %v1321_v62 = vmul.f32 1.442695, %v1320_v61 }
 0xa24   :  { %v1485_v63 = vpop.xlane.xlu1 %1484 }
 0xa25   :  { %2686 = vpow2.f32 %v1321_v62  ;;  %v1486_v0 = vsub.f32 %v1480_v56, %v1485_v63 }
 0xa27   :  { %v1487_v1 = vmul.f32 1.442695, %v1486_v0 }
 0xa28   :  { %v1330_v2 = vpop.permute.xlu1 %1329 }
 0xa29   :  { %2688 = vpow2.f32 %v1487_v1  ;;  %2584 = vmatpush3.msra.mxu1 %v1330_v2 }
 0xa2a   :  { %2593 = vmatprep.subr.mxu1 %v2726_v15 }
 0xa2c   :  { %v1720_v21 = vpop.permute.xlu1 %1719 }
 0xa32   :  { %v2687_v3 = vpop.eup %2686 }
 0xa33   :  { %v1323_v4 = vsel %vm107_vm1, %v2687_v3, 0.0 }
 0xa34   :  { %1324 = vadd.xlane.f32.xlu0 %v1323_v4  ;;  %v2282_v4 = vld [vmem:[%s3061_s1 + $0x70] sm:$0xff] }
 0xa36   :  { %v2689_v5 = vpop.eup %2688 }
 0xa37   :  { %v1489_v6 = vsel %vm107_vm1, %v2689_v5, 0.0 }
 0xa38   :  { %1490 = vadd.xlane.f32.xlu0 %v1489_v6  ;;  %v2280_v6 = vld [vmem:[%s3061_s1 + $0x60] sm:$0xff] }
 0xa4e   :  { %1495 = vrot.lane.b32.xlu0 %v2809_v22, %s2731_s14 }
 0xa50   :  { %v1234_v7 = vpop.f32.mrf.mxu1 }
 0xa51   :  { %v2971_v8 = vadd.f32 %v1234_v7, %v997_v38 }
 0xa52   :  { %v2577_v9 = vpop.f32.mrf.mxu1 }
 0xabd   :  { %v1325_v10 = vpop.xlane.xlu0 %1324 }
 0xabe   :  { %v1326_v11 = vadd.f32 1e-09, %v1325_v10  ;;  %v2416_v10 = vld [vmem:[%s3061_s1 + $0x50] ss:$0 sm:$0xff] }
 0xac0   :  { %2690 = vrcp.f32 %v1326_v11 }
 0xac1   :  { %v1491_v12 = vpop.xlane.xlu0 %1490 }
 0xac2   :  { %v1492_v13 = vadd.f32 1e-09, %v1491_v12 }
 0xac4   :  { %2692 = vrcp.f32 %v1492_v13  ;;  %v2202_v13 = vadd.f32 %v2416_v10, %v2971_v8  ;;  %v2418_v8 = vld [vmem:[%s3061_s1 + $0x78] ss:$0 sm:$0xff] }
 0xac5   :  { %v1496_v17 = vpop.permute.xlu0 %1495 }
 0xacd   :  { %v2691_v14 = vpop.eup %2690 }
 0xace   :  { %v1328_v16 = vmul.f32 %v2691_v14, %v2687_v3  ;;  %v2204_v14 = vld [vmem:[%s3060_s0 + $0x50] sm:$0x3]  ;;  %s2739_s0 = smov [#allocation2]  }
 0xacf   :  { %s2369_s18 = sshll.u32 %s2739_s0, 4  ;;  %s2370_s18 = int_to_ptr.vmem [resolvable:$true] %s2369_s18 }
 0xad0   :  { %2586 = vmatmul.mubr.msk.f32.vlgmr.msra.gmra.mxu1 %vm107_vm1, %v1328_v16  ;;  %v2279_v16 = vld [vmem:[%s3061_s1 + $0x58] sm:$0xff]  ;;  %s2704_s19 = scalar_lea.vmem %s2370_s18, 32  ;;  %p2709_p1 = scmp.lt.s32.totalorder %s2370_s18, %s2370_s18 }
 0xad1   :  { %v2693_v18 = vpop.eup %2692  ;;  %2594 = vmatpush3.msra.mxu1 %v1496_v17  ;;  %2595 = vmatprep.mubr.msk.f32.mxu1 %vm2727_vm2, %v2726_v15  ;;  %p2705_p0 = scmp.ne.s32.totalorder %s2370_s18, %s2704_s19  ;;  %p2710_p2 = scmp.lt.s32.totalorder %s2704_s19, %s2704_s19 }
 0xad2   :  { %v1494_v19 = vmul.f32 %v2693_v18, %v2689_v5  ;;  %2603 = vmatprep.subr.mxu1 %v2726_v15  ;;  %v2281_v5 = vld [vmem:[%s3061_s1 + $0x68] sm:$0xff] }
 0xad3   :  { %p2711_p3 = por %p2710_p2, %p2709_p1 }
 0xad4   :  { %2596 = vmatmul.mubr.msk.f32.vlgmr.msra.gmra.mxu1 %vm107_vm1, %v1494_v19 }
 0xad5   :  { %2604 = vmatpush3.msra.mxu1 %v2860_v57  ;;  %2605 = vmatprep.mubr.msk.f32.mxu1 %vm2727_vm2, %v2726_v15  ;;  %v1718_v57 = vpop.permute.xlu1 %1717  ;;  %p2712_p4 = pnand %p2711_p3, %p2705_p0 }
 0xad6   :  { %2613 = vmatprep.subr.mxu1 %v2726_v15 }
 0xb90   :  { %v1401_v20 = vpop.f32.mrf.mxu1 }
 0xb91   :  { %2606 = vmatmul.mubr.msk.f32.vlgmr.msra.gmra.mxu1 %vm107_vm1, %v1401_v20 }
 0xb92   :  { %v2587_v23 = vpop.f32.mrf.mxu1  ;;  %2615 = vmatprep.mubr.msk.f32.mxu1 %vm2727_vm2, %v2726_v15 }
 0xb94   :  { %v1567_v26 = vpop.f32.mrf.mxu1 }
 0xb95   :  { %2601 = vmatmul.mubr.msk.f32.vlgmr.msra.gmra.mxu0 %vm107_vm1, %v1567_v26 }
 0xb96   :  { %2609 = vmatpush3.xpose.msk.msra.mxu0 %vm107_vm1, %v1720_v21  ;;  %v2597_v27 = vpop.f32.mrf.mxu1  ;;  %2610 = vmatprep.mubr.msk.f32.mxu0 %vm2727_vm2, %v2726_v15 }
 0xb97   :  { %2618 = vmatprep.subr.mxu0 %v2726_v15 }
 0xb99   :  { %2611 = vmatmul.mubr.msk.f32.vlgmr.msra.gmra.mxu0 %vm107_vm1, %v1718_v57 }
 0xb9a   :  { %2619 = vmatpush3.msra.mxu0 %v2905_v25  ;;  %2620 = vmatprep.mubr.msk.f32.mxu0 %vm2727_vm2, %v2726_v15 }
 0xb9b   :  { %2628 = vmatprep.subr.mxu0 %v2726_v15 }
 0xc51   :  { %v1713_v29 = vpop.f32.mrf.mxu1 }
 0xc53   :  { %v2607_v30 = vpop.f32.mrf.mxu1 }
 0xc55   :  { %v1640_v31 = vpop.f32.mrf.mxu0 }
 0xc56   :  { %v1714_v32 = vadd.f32 %v1713_v29, %v1640_v31 }
 0xc57   :  { %v2602_v33 = vpop.f32.mrf.mxu0 }
 0xc59   :  { %v1791_v34 = vpop.f32.mrf.mxu0 }
 0xc5a   :  { %v1792_v35 = vadd.f32 %v1791_v34, %v2952_v50 }
 0xc5b   :  { %v2612_v36 = vpop.f32.mrf.mxu0 }
 0xc5c   :  { %v1795_v28 = vsel %vm107_vm1, %v1792_v35, -inf }
 0xc5d   :  { %1796 = vmax.xlane.f32.xlu0 %v1795_v28 }
 0xc73   :  { %1807 = vrot.lane.b32.xlu0 %v2809_v22, %s2737_s24 }
 0xc77   :  { %1957 = vrot.lane.b32.xlu0 %v2809_v22, %s2736_s23 }
 0xce6   :  { %v1797_v25 = vpop.xlane.xlu0 %1796 }
 0xce7   :  { %v1798_v37 = vsub.f32 %v1792_v35, %v1797_v25 }
 0xce9   :  { %v1799_v24 = vmul.f32 1.442695, %v1798_v37 }
 0xcea   :  { %v1808_v38 = vpop.permute.xlu0 %1807 }
 0xceb   :  { %2694 = vpow2.f32 %v1799_v24  ;;  %2614 = vmatpush3.msra.mxu1 %v1808_v38 }
 0xcec   :  { %2623 = vmatprep.subr.mxu1 %v2726_v15 }
 0xcee   :  { %v1958_v46 = vpop.permute.xlu0 %1957 }
 0xcf8   :  { %v2695_v39 = vpop.eup %2694 }
 0xcf9   :  { %v1801_v40 = vsel %vm107_vm1, %v2695_v39, 0.0 }
 0xcfa   :  { %1802 = vadd.xlane.f32.xlu1 %v1801_v40 }
 0xd0b   :  { %1959 = vrot.lane.b32.xlu1 %v2809_v22, %s2735_s22 }
 0xd83   :  { %v1803_v41 = vpop.xlane.xlu1 %1802 }
 0xd84   :  { %v1804_v42 = vadd.f32 1e-09, %v1803_v41 }
 0xd86   :  { %2696 = vrcp.f32 %v1804_v42 }
 0xd87   :  { %v1960_v45 = vpop.permute.xlu1 %1959 }
 0xd93   :  { %v2697_v43 = vpop.eup %2696 }
 0xd94   :  { %v1806_v44 = vmul.f32 %v2697_v43, %v2695_v39 }
 0xd96   :  { %2616 = vmatmul.mubr.msk.f32.vlgmr.msra.gmra.mxu1 %vm107_vm1, %v1806_v44 }
 0xd97   :  { %2624 = vmatpush3.xpose.msk.msra.mxu1 %vm107_vm1, %v1960_v45  ;;  %2625 = vmatprep.mubr.msk.f32.mxu1 %vm2727_vm2, %v2726_v15 }
 0xd98   :  { %2633 = vmatprep.subr.mxu1 %v2726_v15 }
 0xd9a   :  { %2626 = vmatmul.mubr.msk.f32.vlgmr.msra.gmra.mxu1 %vm107_vm1, %v1958_v46 }
 0xd9b   :  { %2634 = vmatpush3.msra.mxu1 %v2944_v47  ;;  %2635 = vmatprep.mubr.msk.f32.mxu1 %vm2727_vm2, %v2726_v15 }
 0xd9c   :  { %2645 = vmatprep.subr.mxu1 %v2726_v15 }
 0xe56   :  { %v1879_v48 = vpop.f32.mrf.mxu1 }
 0xe57   :  { %2621 = vmatmul.mubr.msk.f32.vlgmr.msra.gmra.mxu0 %vm107_vm1, %v1879_v48 }
 0xe58   :  { %v2617_v49 = vpop.f32.mrf.mxu1  ;;  %2630 = vmatprep.mubr.msk.f32.mxu0 %vm2727_vm2, %v2726_v15 }
 0xe5a   :  { %v2031_v51 = vpop.f32.mrf.mxu1 }
 0xe5b   :  { %v2032_v52 = vadd.f32 %v2031_v51, %v2952_v50 }
 0xe5c   :  { %v2627_v53 = vpop.f32.mrf.mxu1 }
 0xe5d   :  { %v2035_v54 = vsel %vm107_vm1, %v2032_v52, -inf }
 0xe5e   :  { %2036 = vmax.xlane.f32.xlu1 %v2035_v54 }
 0xee7   :  { %v2037_v47 = vpop.xlane.xlu1 %2036 }
 0xee8   :  { %v2038_v55 = vsub.f32 %v2032_v52, %v2037_v47 }
 0xeea   :  { %v2039_v56 = vmul.f32 1.442695, %v2038_v55 }
 0xeec   :  { %2698 = vpow2.f32 %v2039_v56 }
 0xef9   :  { %v2699_v58 = vpop.eup %2698 }
 0xefa   :  { %v2041_v59 = vsel %vm107_vm1, %v2699_v58, 0.0 }
 0xefb   :  { %2042 = vadd.xlane.f32.xlu0 %v2041_v59 }
 0xf11   :  { %2047 = vrot.lane.b32.xlu0 %v2809_v22, %s2738_s27 }
 0xf17   :  { %v1952_v60 = vpop.f32.mrf.mxu0 }
 0xf18   :  { %v1956_v61 = vadd.f32 %v1952_v60, %v1714_v32 }
 0xf19   :  { %v2622_v62 = vpop.f32.mrf.mxu0 }
 0xf84   :  { %v2043_v63 = vpop.xlane.xlu0 %2042 }
 0xf85   :  { %v2044_v50 = vadd.f32 1e-09, %v2043_v63 }
 0xf87   :  { %2700 = vrcp.f32 %v2044_v50 }
 0xf88   :  { %v2048_v0 = vpop.permute.xlu0 %2047 }
 0xf89   :  { %2629 = vmatpush3.msra.mxu0 %v2048_v0 }
 0xf8a   :  { %2638 = vmatprep.subr.mxu0 %v2726_v15 }
 0xf94   :  { %v2701_v1 = vpop.eup %2700 }
 0xf95   :  { %v2046_v2 = vmul.f32 %v2701_v1, %v2699_v58 }
 0xf97   :  { %2631 = vmatmul.mubr.msk.f32.vlgmr.msra.gmra.mxu0 %vm107_vm1, %v2046_v2 }
 0xf98   :  { %2642 = vmatprep.mubr.msk.f32.mxu0 %vm2727_vm2, %v2726_v15 }
0x1057   :  { %v2119_v3 = vpop.f32.mrf.mxu0 }
0x1058   :  { %2636 = vmatmul.mubr.msk.f32.vlgmr.msra.gmra.mxu1 %vm107_vm1, %v2119_v3 }
0x1059   :  { %v2632_v22 = vpop.f32.mrf.mxu0  ;;  %2653 = vmatprep.mubr.msk.f32.mxu1 %vm2727_vm2, %v2726_v15  ;;  %2646 = vmatpush3.msra.mxu1 %v2282_v4 }
0x105a   :  { %2647 = vmatprep.subr.mxu1 %v2726_v15 }
0x105b   :  { %2648 = vmatpush3.msra.mxu1 %v2281_v5 }
0x105c   :  { %2649 = vmatprep.subr.mxu1 %v2726_v15 }
0x105d   :  { %2650 = vmatpush3.msra.mxu1 %v2280_v6 }
0x105e   :  { %2651 = vmatprep.subr.mxu1 %v2726_v15 }
0x105f   :  { %2652 = vmatpush3.msra.mxu1 %v2279_v16 }
0x1118   :  { %v2192_v7 = vpop.f32.mrf.mxu1 }
0x1119   :  { %v2196_v9 = vadd.f32 %v2192_v7, %v1956_v61 }
0x111a   :  { %v2637_v11 = vpop.f32.mrf.mxu1 }
0x111b   :  { %v2203_v12 = vadd.f32 %v2416_v10, %v2196_v9 }
0x111d   :  { %2639 = vmatpush3.msra.mxu0 %v2203_v12 }
0x111e   :  { %2640 = vmatprep.subr.mxu0 %v2726_v15 }
0x111f   :  { %2641 = vmatpush3.msra.mxu0 %v2202_v13 }
0x1120   :  { %2643 = vmatmul.mubr.msk.f32.vlgmr.msra.gmra.mxu0 %vm2205_vm3, %v2204_v14 }
0x11e0   :  { %v2275_v17 = vpop.f32.mrf.mxu0 }
0x11e1   :  { %2654 = vmatmul.mubr.msk.f32.vlgmr.msra.gmra.mxu1 %vm18_vm0, %v2275_v17 }
0x11e2   :  { %v2644_v18 = vpop.f32.mrf.mxu0 }
0x12a1   :  { %v2357_v19 = vpop.f32.mrf.mxu1 }
0x12a2   :  { %v2358_v20 = vadd.f32 %v2418_v8, %v2357_v19 }
0x12a3   :  { %v2655_v21 = vpop.f32.mrf.mxu1 }
0x12a4   :  { %2702 = vtanh.f32 %v2358_v20 }
0x12b1   :  { %v2703_v15 = vpop.eup %2702 }
0x12b2   :  { %2362 = vst [vmem:[#allocation2] sm:$0x3] %v2703_v15 }
0x12b3   :  { %2715 = shalt.err (!%p2712_p4)
}
0x12b4   :  { %2372 = dma.vmem_to_hbm [thread:$0]  %s2370_s18, 32, %s3062_s2, [#allocation3]  }
0x12b5   :  { %2724 = dma.done.wait [#allocation3], 32  }
0x12b6   :  { %2725 = vsyncadd [#allocation3], 4294967264 }
0x12b7   :  { %2376 = vsyncpa [#allocation3], 1 }

</bundles_post_ra>
